<compile_context>
chip_gen: v5e
topology: v5e:2x2
jax: 0.10.0
libtpu: 0.0.40
codegen_flags: <defaults>
</compile_context>

<pallas_src>
import math

import jax
import jax.numpy as jnp
from jax.experimental import pallas as pl
from jax.experimental.pallas import tpu as pltpu


def _layer_norm(y, gamma, beta, eps=1e-5):
    mu = jnp.mean(y, axis=-1, keepdims=True)
    var = jnp.mean((y - mu) ** 2, axis=-1, keepdims=True)
    return (y - mu) * jax.lax.rsqrt(var + eps) * gamma + beta


def _make_kernel(nhead, need_weights):
    def kernel(x_ref, wqkv_ref, bqkv_ref, wo_ref, bo_ref,
               w1_ref, b1_ref, w2_ref, b2_ref,
               g1_ref, be1_ref, g2_ref, be2_ref,
               out_ref, *attn_refs):
        Bb, S, D = x_ref.shape
        hd = D // nhead
        M = Bb * S

        # Flatten batch block into the matmul M dimension; keep an f32 copy
        # for the residual path, bf16 copies for the MXU.
        x2 = x_ref[...].reshape(M, D)
        x_bf = x2.astype(jnp.bfloat16)

        # Fused QKV projection (1/sqrt(hd) pre-folded into the Q columns, so
        # no per-step scaling multiply is needed here).
        qkv = jnp.dot(x_bf, wqkv_ref[...],
                      preferred_element_type=jnp.float32) + bqkv_ref[...]
        q = qkv[:, 0:D].astype(jnp.bfloat16).reshape(Bb, S, D)
        k = qkv[:, D:2 * D].astype(jnp.bfloat16).reshape(Bb, S, D)
        v = qkv[:, 2 * D:3 * D].astype(jnp.bfloat16).reshape(Bb, S, D)

        # Per-head attention, batched over the Bb batch rows of this step.
        # TODO(synk): a single head-batched 4-D contraction would remove the
        # per-head lane slices + concat, but multi-batch-dim dot_general
        # lowering is not guaranteed on Mosaic; keep the trace-time unrolled
        # form for robustness.
        attn_sum = jnp.zeros((Bb, S, S), jnp.float32) if need_weights else None
        ctx_parts = []
        for h in range(nhead):
            lo = h * hd
            qh = q[:, :, lo:lo + hd]
            kh = k[:, :, lo:lo + hd]
            vh = v[:, :, lo:lo + hd]
            s = jnp.einsum('bqd,bkd->bqk', qh, kh,
                           preferred_element_type=jnp.float32)
            s = s - jnp.max(s, axis=-1, keepdims=True)
            p = jnp.exp(s)
            # Divide moved to the (otherwise idle) EUP slot.
            p = p * pl.reciprocal(jnp.sum(p, axis=-1, keepdims=True),
                                  approx=True)
            if need_weights:
                attn_sum = attn_sum + p
            ctx_parts.append(
                jnp.einsum('bqk,bkd->bqd', p.astype(jnp.bfloat16), vh,
                           preferred_element_type=jnp.float32))
        if need_weights:
            attn_refs[0][...] = attn_sum * (1.0 / nhead)   # head-averaged
        ctx = jnp.concatenate(ctx_parts, axis=-1).reshape(M, D)

        # Output projection (weight pre-transposed + bf16 in the wrapper).
        attn_out = jnp.dot(ctx.astype(jnp.bfloat16), wo_ref[...],
                           preferred_element_type=jnp.float32) + bo_ref[...]

        # Residual + LayerNorm 1 (f32 throughout).
        src1 = _layer_norm(x2 + attn_out, g1_ref[...], be1_ref[...])

        # Feed-forward (ReLU), bf16 matmul inputs, f32 accumulation.
        hid = jnp.dot(src1.astype(jnp.bfloat16), w1_ref[...],
                      preferred_element_type=jnp.float32) + b1_ref[...]
        hid = jnp.maximum(hid, 0.0)
        ff = jnp.dot(hid.astype(jnp.bfloat16), w2_ref[...],
                     preferred_element_type=jnp.float32) + b2_ref[...]

        # Residual + LayerNorm 2.
        out_ref[...] = _layer_norm(src1 + ff, g2_ref[...],
                                   be2_ref[...]).reshape(Bb, S, D)

    return kernel


def _pick_batch_block(B, S, max_rows=512, min_grid=2):
    """Largest divisor of B with Bb*S <= max_rows rows, while keeping at
    least `min_grid` grid steps so both v7x TensorCores get work."""
    cap = B if B < min_grid else B // min_grid
    bb = 1
    for d in range(1, cap + 1):
        if B % d == 0 and d * S <= max_rows:
            bb = d
    return bb


def _resident_spec(shape, index_map):
    """BlockSpec for a block whose index never changes: single-buffer it."""
    try:
        return pl.BlockSpec(shape, index_map, pipeline_mode=pl.Buffered(1))
    except (TypeError, ValueError):
        # Fallback for API variants without pipeline_mode / Buffered(1).
        return pl.BlockSpec(shape, index_map)


def _vmem_budget_bytes(Bb, S, D, FF):
    """Rough per-step VMEM footprint: resident bf16 weights (single-buffered)
    + f32 vectors + double-buffered activation blocks + intermediates."""
    weights = 2 * (3 * D * D + D * D + 2 * D * FF)          # bf16
    vectors = 4 * (3 * D + FF + 6 * D)                      # f32 (1,N) rows
    acts = 2 * 4 * Bb * S * (2 * D + S)                     # x/out/attn blocks
    interm = 4 * Bb * S * (3 * D + 3 * S + 2 * D + FF)      # qkv/p/ctx/hid
    return weights + vectors + acts + interm


def prepare_params(params, nhead):
    """One-time weight prep (call once, reuse across forward calls):
    transpose, fold 1/sqrt(hd) into the Q in-projection, cast to bf16."""
    D = params["out_w"].shape[0]
    FF = params["w1"].shape[0]
    hd = D // nhead
    scaling = 1.0 / math.sqrt(hd)
    scale = jnp.concatenate([jnp.full((D,), scaling, jnp.float32),
                             jnp.ones((2 * D,), jnp.float32)])

    wqkv = jnp.transpose(params["in_w"] * scale[:, None]).astype(jnp.bfloat16)
    bqkv = (params["in_b"] * scale).reshape(1, 3 * D).astype(jnp.float32)
    wo = jnp.transpose(params["out_w"]).astype(jnp.bfloat16)
    bo = params["out_b"].reshape(1, D).astype(jnp.float32)
    w1 = jnp.transpose(params["w1"]).astype(jnp.bfloat16)
    b1 = params["b1"].reshape(1, FF).astype(jnp.float32)
    w2 = jnp.transpose(params["w2"]).astype(jnp.bfloat16)
    b2 = params["b2"].reshape(1, D).astype(jnp.float32)
    g1 = params["ln1_w"].reshape(1, D).astype(jnp.float32)
    be1 = params["ln1_b"].reshape(1, D).astype(jnp.float32)
    g2 = params["ln2_w"].reshape(1, D).astype(jnp.float32)
    be2 = params["ln2_b"].reshape(1, D).astype(jnp.float32)

    return {"args": (wqkv, bqkv, wo, bo, w1, b1, w2, b2, g1, be1, g2, be2),
            "D": D, "FF": FF, "nhead": nhead}


def transformer_encoder_layer(src, prepared, need_weights=True):
    """src: (S, B, D) f32.  Returns (out (S, B, D), attn (B, S, S) or None)."""
    S, B, D = src.shape
    assert D == prepared["D"]
    FF = prepared["FF"]
    nhead = prepared["nhead"]

    x = jnp.transpose(src, (1, 0, 2)).astype(jnp.float32)   # (B, S, D)

    Bb = _pick_batch_block(B, S)
    grid = (B // Bb,)

    full2 = lambda b: (0, 0)
    weight_specs = [
        _resident_spec((D, 3 * D), full2),   # in_proj weight^T (bf16)
        _resident_spec((1, 3 * D), full2),   # in_proj bias
        _resident_spec((D, D), full2),       # out_proj weight^T (bf16)
        _resident_spec((1, D), full2),       # out_proj bias
        _resident_spec((D, FF), full2),      # linear1 weight^T (bf16)
        _resident_spec((1, FF), full2),      # linear1 bias
        _resident_spec((FF, D), full2),      # linear2 weight^T (bf16)
        _resident_spec((1, D), full2),       # linear2 bias
        _resident_spec((1, D), full2),       # norm1 weight
        _resident_spec((1, D), full2),       # norm1 bias
        _resident_spec((1, D), full2),       # norm2 weight
        _resident_spec((1, D), full2),       # norm2 bias
    ]
    in_specs = [pl.BlockSpec((Bb, S, D), lambda b: (b, 0, 0))] + weight_specs

    if need_weights:
        out_shape = (jax.ShapeDtypeStruct((B, S, D), jnp.float32),
                     jax.ShapeDtypeStruct((B, S, S), jnp.float32))
        out_specs = (pl.BlockSpec((Bb, S, D), lambda b: (b, 0, 0)),
                     pl.BlockSpec((Bb, S, S), lambda b: (b, 0, 0)))
    else:
        out_shape = jax.ShapeDtypeStruct((B, S, D), jnp.float32)
        out_specs = pl.BlockSpec((Bb, S, D), lambda b: (b, 0, 0))

    est = _vmem_budget_bytes(Bb, S, D, FF)
    vmem_limit = int(min(max(2 * est, 16 * 1024 * 1024), 64 * 1024 * 1024))

    results = pl.pallas_call(
        _make_kernel(nhead, need_weights),
        out_shape=out_shape,
        grid=grid,
        in_specs=in_specs,
        out_specs=out_specs,
        compiler_params=pltpu.CompilerParams(
            dimension_semantics=("parallel",),
            vmem_limit_bytes=vmem_limit),
    )(x, *prepared["args"])

    if need_weights:
        out, attn = results
        return jnp.transpose(out, (1, 0, 2)), attn
    return jnp.transpose(results, (1, 0, 2)), None


if __name__ == "__main__":
    # Small shapes consistent with the module: seq=8, batch=2, d_model=32,
    # nhead=4, dim_feedforward=64.
    S, B, D, H, FF = 8, 2, 32, 4, 64
    key = jax.random.PRNGKey(0)
    ks = jax.random.split(key, 10)

    src = jax.random.normal(ks[0], (S, B, D), jnp.float32)

    params = {
        "in_w": jax.random.normal(ks[1], (3 * D, D), jnp.float32) / math.sqrt(D),
        "in_b": jax.random.normal(ks[2], (3 * D,), jnp.float32) * 0.02,
        "out_w": jax.random.normal(ks[3], (D, D), jnp.float32) / math.sqrt(D),
        "out_b": jnp.zeros((D,), jnp.float32),
        "w1": jax.random.normal(ks[4], (FF, D), jnp.float32) / math.sqrt(D),
        "b1": jax.random.normal(ks[5], (FF,), jnp.float32) * 0.02,
        "w2": jax.random.normal(ks[6], (D, FF), jnp.float32) / math.sqrt(FF),
        "b2": jax.random.normal(ks[7], (D,), jnp.float32) * 0.02,
        "ln1_w": jnp.ones((D,), jnp.float32),
        "ln1_b": jnp.zeros((D,), jnp.float32),
        "ln2_w": jnp.ones((D,), jnp.float32),
        "ln2_b": jnp.zeros((D,), jnp.float32),
    }

    prepared = prepare_params(params, H)        # one-time weight prep (cached)
    out, attn = transformer_encoder_layer(src, prepared, need_weights=True)
    jax.block_until_ready((out, attn))
    assert out.shape == (S, B, D) and attn.shape == (B, S, S)
    assert bool(jnp.all(jnp.isfinite(out))) and bool(jnp.all(jnp.isfinite(attn)))
    print("KERNEL_OK")
</pallas_src>

<mosaic_0001>
module attributes {stable_mosaic.version = 11 : i64} {
  func.func @kernel(%arg0: i32, %arg1: memref<1x8x32xf32, #tpu.memory_space<vmem>>, %arg2: memref<32x96xbf16, #tpu.memory_space<vmem>>, %arg3: memref<1x96xf32, #tpu.memory_space<vmem>>, %arg4: memref<32x32xbf16, #tpu.memory_space<vmem>>, %arg5: memref<1x32xf32, #tpu.memory_space<vmem>>, %arg6: memref<32x64xbf16, #tpu.memory_space<vmem>>, %arg7: memref<1x64xf32, #tpu.memory_space<vmem>>, %arg8: memref<64x32xbf16, #tpu.memory_space<vmem>>, %arg9: memref<1x32xf32, #tpu.memory_space<vmem>>, %arg10: memref<1x32xf32, #tpu.memory_space<vmem>>, %arg11: memref<1x32xf32, #tpu.memory_space<vmem>>, %arg12: memref<1x32xf32, #tpu.memory_space<vmem>>, %arg13: memref<1x32xf32, #tpu.memory_space<vmem>>, %arg14: memref<1x8x32xf32, #tpu.memory_space<vmem>>, %arg15: memref<1x8x8xf32, #tpu.memory_space<vmem>>) attributes {dimension_semantics = [#tpu.dimension_semantics<parallel>], iteration_bounds = array<i64: 2>, scalar_prefetch = 0 : i64, scratch_operands = 0 : i64, tpu.core_type = #tpu.core_type<tc>, window_params = [{transform_indices = @transform_0, window_bounds = array<i64: 1, 8, 32>}, {pipeline_mode = #tpu.pipeline_mode<synchronous>, transform_indices = @transform_1, window_bounds = array<i64: 32, 96>}, {pipeline_mode = #tpu.pipeline_mode<synchronous>, transform_indices = @transform_2, window_bounds = array<i64: 1, 96>}, {pipeline_mode = #tpu.pipeline_mode<synchronous>, transform_indices = @transform_3, window_bounds = array<i64: 32, 32>}, {pipeline_mode = #tpu.pipeline_mode<synchronous>, transform_indices = @transform_4, window_bounds = array<i64: 1, 32>}, {pipeline_mode = #tpu.pipeline_mode<synchronous>, transform_indices = @transform_5, window_bounds = array<i64: 32, 64>}, {pipeline_mode = #tpu.pipeline_mode<synchronous>, transform_indices = @transform_6, window_bounds = array<i64: 1, 64>}, {pipeline_mode = #tpu.pipeline_mode<synchronous>, transform_indices = @transform_7, window_bounds = array<i64: 64, 32>}, {pipeline_mode = #tpu.pipeline_mode<synchronous>, transform_indices = @transform_8, window_bounds = array<i64: 1, 32>}, {pipeline_mode = #tpu.pipeline_mode<synchronous>, transform_indices = @transform_9, window_bounds = array<i64: 1, 32>}, {pipeline_mode = #tpu.pipeline_mode<synchronous>, transform_indices = @transform_10, window_bounds = array<i64: 1, 32>}, {pipeline_mode = #tpu.pipeline_mode<synchronous>, transform_indices = @transform_11, window_bounds = array<i64: 1, 32>}, {pipeline_mode = #tpu.pipeline_mode<synchronous>, transform_indices = @transform_12, window_bounds = array<i64: 1, 32>}, {transform_indices = @transform_13, window_bounds = array<i64: 1, 8, 32>}, {transform_indices = @transform_14, window_bounds = array<i64: 1, 8, 8>}]} {
    %c0 = arith.constant 0 : index
    %c0_0 = arith.constant 0 : index
    %c0_1 = arith.constant 0 : index
    %0 = vector.load %arg1[%c0, %c0_0, %c0_1] : memref<1x8x32xf32, #tpu.memory_space<vmem>>, vector<1x8x32xf32>
    %1 = vector.shape_cast %0 : vector<1x8x32xf32> to vector<8x32xf32>
    %2 = arith.truncf %1 : vector<8x32xf32> to vector<8x32xbf16>
    %c0_2 = arith.constant 0 : index
    %c0_3 = arith.constant 0 : index
    %3 = vector.load %arg2[%c0_2, %c0_3] : memref<32x96xbf16, #tpu.memory_space<vmem>>, vector<32x96xbf16>
    %cst = arith.constant dense<0.000000e+00> : vector<8x96xf32>
    %4 = tpu.matmul %2, %3, %cst {dimension_numbers = #tpu.dot_dimension_numbers<[1], [0], [0], [1], [0, 0, 1, 1], [], []>} : vector<8x32xbf16>, vector<32x96xbf16>, vector<8x96xf32> -> vector<8x96xf32>
    %c0_4 = arith.constant 0 : index
    %c0_5 = arith.constant 0 : index
    %5 = vector.load %arg3[%c0_4, %c0_5] : memref<1x96xf32, #tpu.memory_space<vmem>>, vector<1x96xf32>
    %6 = vector.broadcast %5 : vector<1x96xf32> to vector<8x96xf32>
    %7 = arith.addf %4, %6 : vector<8x96xf32>
    %8 = vector.extract_strided_slice %7 {offsets = [0, 0], sizes = [8, 32], strides = [1, 1]} : vector<8x96xf32> to vector<8x32xf32>
    %9 = arith.truncf %8 : vector<8x32xf32> to vector<8x32xbf16>
    %10 = vector.shape_cast %9 : vector<8x32xbf16> to vector<1x8x32xbf16>
    %11 = vector.extract_strided_slice %7 {offsets = [0, 32], sizes = [8, 32], strides = [1, 1]} : vector<8x96xf32> to vector<8x32xf32>
    %12 = arith.truncf %11 : vector<8x32xf32> to vector<8x32xbf16>
    %13 = vector.shape_cast %12 : vector<8x32xbf16> to vector<1x8x32xbf16>
    %14 = vector.extract_strided_slice %7 {offsets = [0, 64], sizes = [8, 32], strides = [1, 1]} : vector<8x96xf32> to vector<8x32xf32>
    %15 = arith.truncf %14 : vector<8x32xf32> to vector<8x32xbf16>
    %16 = vector.shape_cast %15 : vector<8x32xbf16> to vector<1x8x32xbf16>
    %cst_6 = arith.constant 0.000000e+00 : f32
    %17 = vector.broadcast %cst_6 : f32 to vector<1x8x8xf32>
    %18 = vector.extract_strided_slice %10 {offsets = [0, 0, 0], sizes = [1, 8, 8], strides = [1, 1, 1]} : vector<1x8x32xbf16> to vector<1x8x8xbf16>
    %19 = vector.extract_strided_slice %13 {offsets = [0, 0, 0], sizes = [1, 8, 8], strides = [1, 1, 1]} : vector<1x8x32xbf16> to vector<1x8x8xbf16>
    %20 = vector.extract_strided_slice %16 {offsets = [0, 0, 0], sizes = [1, 8, 8], strides = [1, 1, 1]} : vector<1x8x32xbf16> to vector<1x8x8xbf16>
    "tpu.trace_start"() <{level = 10 : i32, message = "bqd,bkd->bqk"}> : () -> ()
    %cst_7 = arith.constant dense<0.000000e+00> : vector<1x8x8xf32>
    %21 = tpu.matmul %18, %19, %cst_7 {dimension_numbers = #tpu.dot_dimension_numbers<[2], [2], [1], [1], [0, 0, 0, 1, 1, 1], [0], [0]>} : vector<1x8x8xbf16>, vector<1x8x8xbf16>, vector<1x8x8xf32> -> vector<1x8x8xf32>
    "tpu.trace_stop"() : () -> ()
    %cst_8 = arith.constant dense<0xFF800000> : vector<1x8xf32>
    %22 = vector.multi_reduction <maximumf>, %21, %cst_8 [2] : vector<1x8x8xf32> to vector<1x8xf32>
    %23 = vector.shape_cast %22 : vector<1x8xf32> to vector<1x8x1xf32>
    %24 = vector.broadcast %23 : vector<1x8x1xf32> to vector<1x8x8xf32>
    %25 = arith.subf %21, %24 : vector<1x8x8xf32>
    %26 = math.exp %25 : vector<1x8x8xf32>
    %cst_9 = arith.constant dense<0.000000e+00> : vector<1x8xf32>
    %27 = vector.multi_reduction <add>, %26, %cst_9 [2] : vector<1x8x8xf32> to vector<1x8xf32>
    %28 = vector.shape_cast %27 : vector<1x8xf32> to vector<1x8x1xf32>
    %29 = tpu.reciprocal %28 {approx = true} : vector<1x8x1xf32> -> vector<1x8x1xf32>
    %30 = vector.broadcast %29 : vector<1x8x1xf32> to vector<1x8x8xf32>
    %31 = arith.mulf %26, %30 : vector<1x8x8xf32>
    %32 = arith.addf %17, %31 : vector<1x8x8xf32>
    %33 = arith.truncf %31 : vector<1x8x8xf32> to vector<1x8x8xbf16>
    "tpu.trace_start"() <{level = 10 : i32, message = "bqk,bkd->bqd"}> : () -> ()
    %cst_10 = arith.constant dense<0.000000e+00> : vector<1x8x8xf32>
    %34 = tpu.matmul %33, %20, %cst_10 {dimension_numbers = #tpu.dot_dimension_numbers<[2], [1], [1], [2], [0, 0, 0, 1, 1, 2], [0], [0]>} : vector<1x8x8xbf16>, vector<1x8x8xbf16>, vector<1x8x8xf32> -> vector<1x8x8xf32>
    "tpu.trace_stop"() : () -> ()
    %35 = vector.extract_strided_slice %10 {offsets = [0, 0, 8], sizes = [1, 8, 8], strides = [1, 1, 1]} : vector<1x8x32xbf16> to vector<1x8x8xbf16>
    %36 = vector.extract_strided_slice %13 {offsets = [0, 0, 8], sizes = [1, 8, 8], strides = [1, 1, 1]} : vector<1x8x32xbf16> to vector<1x8x8xbf16>
    %37 = vector.extract_strided_slice %16 {offsets = [0, 0, 8], sizes = [1, 8, 8], strides = [1, 1, 1]} : vector<1x8x32xbf16> to vector<1x8x8xbf16>
    "tpu.trace_start"() <{level = 10 : i32, message = "bqd,bkd->bqk"}> : () -> ()
    %cst_11 = arith.constant dense<0.000000e+00> : vector<1x8x8xf32>
    %38 = tpu.matmul %35, %36, %cst_11 {dimension_numbers = #tpu.dot_dimension_numbers<[2], [2], [1], [1], [0, 0, 0, 1, 1, 1], [0], [0]>} : vector<1x8x8xbf16>, vector<1x8x8xbf16>, vector<1x8x8xf32> -> vector<1x8x8xf32>
    "tpu.trace_stop"() : () -> ()
    %cst_12 = arith.constant dense<0xFF800000> : vector<1x8xf32>
    %39 = vector.multi_reduction <maximumf>, %38, %cst_12 [2] : vector<1x8x8xf32> to vector<1x8xf32>
    %40 = vector.shape_cast %39 : vector<1x8xf32> to vector<1x8x1xf32>
    %41 = vector.broadcast %40 : vector<1x8x1xf32> to vector<1x8x8xf32>
    %42 = arith.subf %38, %41 : vector<1x8x8xf32>
    %43 = math.exp %42 : vector<1x8x8xf32>
    %cst_13 = arith.constant dense<0.000000e+00> : vector<1x8xf32>
    %44 = vector.multi_reduction <add>, %43, %cst_13 [2] : vector<1x8x8xf32> to vector<1x8xf32>
    %45 = vector.shape_cast %44 : vector<1x8xf32> to vector<1x8x1xf32>
    %46 = tpu.reciprocal %45 {approx = true} : vector<1x8x1xf32> -> vector<1x8x1xf32>
    %47 = vector.broadcast %46 : vector<1x8x1xf32> to vector<1x8x8xf32>
    %48 = arith.mulf %43, %47 : vector<1x8x8xf32>
    %49 = arith.addf %32, %48 : vector<1x8x8xf32>
    %50 = arith.truncf %48 : vector<1x8x8xf32> to vector<1x8x8xbf16>
    "tpu.trace_start"() <{level = 10 : i32, message = "bqk,bkd->bqd"}> : () -> ()
    %cst_14 = arith.constant dense<0.000000e+00> : vector<1x8x8xf32>
    %51 = tpu.matmul %50, %37, %cst_14 {dimension_numbers = #tpu.dot_dimension_numbers<[2], [1], [1], [2], [0, 0, 0, 1, 1, 2], [0], [0]>} : vector<1x8x8xbf16>, vector<1x8x8xbf16>, vector<1x8x8xf32> -> vector<1x8x8xf32>
    "tpu.trace_stop"() : () -> ()
    %52 = vector.extract_strided_slice %10 {offsets = [0, 0, 16], sizes = [1, 8, 8], strides = [1, 1, 1]} : vector<1x8x32xbf16> to vector<1x8x8xbf16>
    %53 = vector.extract_strided_slice %13 {offsets = [0, 0, 16], sizes = [1, 8, 8], strides = [1, 1, 1]} : vector<1x8x32xbf16> to vector<1x8x8xbf16>
    %54 = vector.extract_strided_slice %16 {offsets = [0, 0, 16], sizes = [1, 8, 8], strides = [1, 1, 1]} : vector<1x8x32xbf16> to vector<1x8x8xbf16>
    "tpu.trace_start"() <{level = 10 : i32, message = "bqd,bkd->bqk"}> : () -> ()
    %cst_15 = arith.constant dense<0.000000e+00> : vector<1x8x8xf32>
    %55 = tpu.matmul %52, %53, %cst_15 {dimension_numbers = #tpu.dot_dimension_numbers<[2], [2], [1], [1], [0, 0, 0, 1, 1, 1], [0], [0]>} : vector<1x8x8xbf16>, vector<1x8x8xbf16>, vector<1x8x8xf32> -> vector<1x8x8xf32>
    "tpu.trace_stop"() : () -> ()
    %cst_16 = arith.constant dense<0xFF800000> : vector<1x8xf32>
    %56 = vector.multi_reduction <maximumf>, %55, %cst_16 [2] : vector<1x8x8xf32> to vector<1x8xf32>
    %57 = vector.shape_cast %56 : vector<1x8xf32> to vector<1x8x1xf32>
    %58 = vector.broadcast %57 : vector<1x8x1xf32> to vector<1x8x8xf32>
    %59 = arith.subf %55, %58 : vector<1x8x8xf32>
    %60 = math.exp %59 : vector<1x8x8xf32>
    %cst_17 = arith.constant dense<0.000000e+00> : vector<1x8xf32>
    %61 = vector.multi_reduction <add>, %60, %cst_17 [2] : vector<1x8x8xf32> to vector<1x8xf32>
    %62 = vector.shape_cast %61 : vector<1x8xf32> to vector<1x8x1xf32>
    %63 = tpu.reciprocal %62 {approx = true} : vector<1x8x1xf32> -> vector<1x8x1xf32>
    %64 = vector.broadcast %63 : vector<1x8x1xf32> to vector<1x8x8xf32>
    %65 = arith.mulf %60, %64 : vector<1x8x8xf32>
    %66 = arith.addf %49, %65 : vector<1x8x8xf32>
    %67 = arith.truncf %65 : vector<1x8x8xf32> to vector<1x8x8xbf16>
    "tpu.trace_start"() <{level = 10 : i32, message = "bqk,bkd->bqd"}> : () -> ()
    %cst_18 = arith.constant dense<0.000000e+00> : vector<1x8x8xf32>
    %68 = tpu.matmul %67, %54, %cst_18 {dimension_numbers = #tpu.dot_dimension_numbers<[2], [1], [1], [2], [0, 0, 0, 1, 1, 2], [0], [0]>} : vector<1x8x8xbf16>, vector<1x8x8xbf16>, vector<1x8x8xf32> -> vector<1x8x8xf32>
    "tpu.trace_stop"() : () -> ()
    %69 = vector.extract_strided_slice %10 {offsets = [0, 0, 24], sizes = [1, 8, 8], strides = [1, 1, 1]} : vector<1x8x32xbf16> to vector<1x8x8xbf16>
    %70 = vector.extract_strided_slice %13 {offsets = [0, 0, 24], sizes = [1, 8, 8], strides = [1, 1, 1]} : vector<1x8x32xbf16> to vector<1x8x8xbf16>
    %71 = vector.extract_strided_slice %16 {offsets = [0, 0, 24], sizes = [1, 8, 8], strides = [1, 1, 1]} : vector<1x8x32xbf16> to vector<1x8x8xbf16>
    "tpu.trace_start"() <{level = 10 : i32, message = "bqd,bkd->bqk"}> : () -> ()
    %cst_19 = arith.constant dense<0.000000e+00> : vector<1x8x8xf32>
    %72 = tpu.matmul %69, %70, %cst_19 {dimension_numbers = #tpu.dot_dimension_numbers<[2], [2], [1], [1], [0, 0, 0, 1, 1, 1], [0], [0]>} : vector<1x8x8xbf16>, vector<1x8x8xbf16>, vector<1x8x8xf32> -> vector<1x8x8xf32>
    "tpu.trace_stop"() : () -> ()
    %cst_20 = arith.constant dense<0xFF800000> : vector<1x8xf32>
    %73 = vector.multi_reduction <maximumf>, %72, %cst_20 [2] : vector<1x8x8xf32> to vector<1x8xf32>
    %74 = vector.shape_cast %73 : vector<1x8xf32> to vector<1x8x1xf32>
    %75 = vector.broadcast %74 : vector<1x8x1xf32> to vector<1x8x8xf32>
    %76 = arith.subf %72, %75 : vector<1x8x8xf32>
    %77 = math.exp %76 : vector<1x8x8xf32>
    %cst_21 = arith.constant dense<0.000000e+00> : vector<1x8xf32>
    %78 = vector.multi_reduction <add>, %77, %cst_21 [2] : vector<1x8x8xf32> to vector<1x8xf32>
    %79 = vector.shape_cast %78 : vector<1x8xf32> to vector<1x8x1xf32>
    %80 = tpu.reciprocal %79 {approx = true} : vector<1x8x1xf32> -> vector<1x8x1xf32>
    %81 = vector.broadcast %80 : vector<1x8x1xf32> to vector<1x8x8xf32>
    %82 = arith.mulf %77, %81 : vector<1x8x8xf32>
    %83 = arith.addf %66, %82 : vector<1x8x8xf32>
    %84 = arith.truncf %82 : vector<1x8x8xf32> to vector<1x8x8xbf16>
    "tpu.trace_start"() <{level = 10 : i32, message = "bqk,bkd->bqd"}> : () -> ()
    %cst_22 = arith.constant dense<0.000000e+00> : vector<1x8x8xf32>
    %85 = tpu.matmul %84, %71, %cst_22 {dimension_numbers = #tpu.dot_dimension_numbers<[2], [1], [1], [2], [0, 0, 0, 1, 1, 2], [0], [0]>} : vector<1x8x8xbf16>, vector<1x8x8xbf16>, vector<1x8x8xf32> -> vector<1x8x8xf32>
    "tpu.trace_stop"() : () -> ()
    %cst_23 = arith.constant 2.500000e-01 : f32
    %86 = vector.broadcast %cst_23 : f32 to vector<1x8x8xf32>
    %87 = arith.mulf %83, %86 : vector<1x8x8xf32>
    %c0_24 = arith.constant 0 : index
    %c0_25 = arith.constant 0 : index
    %c0_26 = arith.constant 0 : index
    %88 = vector.load %arg15[%c0_24, %c0_25, %c0_26] : memref<1x8x8xf32, #tpu.memory_space<vmem>>, vector<1x8x8xf32>
    tpu.vector_store %arg15[%c0_24, %c0_25, %c0_26], %87 {strides = array<i32>} : memref<1x8x8xf32, #tpu.memory_space<vmem>>, vector<1x8x8xf32>,
    %89 = tpu.concatenate %34, %51, %68, %85 in 2 : vector<1x8x8xf32>, vector<1x8x8xf32>, vector<1x8x8xf32>, vector<1x8x8xf32> -> vector<1x8x32xf32>
    %90 = vector.shape_cast %89 : vector<1x8x32xf32> to vector<8x32xf32>
    %91 = arith.truncf %90 : vector<8x32xf32> to vector<8x32xbf16>
    %c0_27 = arith.constant 0 : index
    %c0_28 = arith.constant 0 : index
    %92 = vector.load %arg4[%c0_27, %c0_28] : memref<32x32xbf16, #tpu.memory_space<vmem>>, vector<32x32xbf16>
    %cst_29 = arith.constant dense<0.000000e+00> : vector<8x32xf32>
    %93 = tpu.matmul %91, %92, %cst_29 {dimension_numbers = #tpu.dot_dimension_numbers<[1], [0], [0], [1], [0, 0, 1, 1], [], []>} : vector<8x32xbf16>, vector<32x32xbf16>, vector<8x32xf32> -> vector<8x32xf32>
    %c0_30 = arith.constant 0 : index
    %c0_31 = arith.constant 0 : index
    %94 = vector.load %arg5[%c0_30, %c0_31] : memref<1x32xf32, #tpu.memory_space<vmem>>, vector<1x32xf32>
    %95 = vector.broadcast %94 : vector<1x32xf32> to vector<8x32xf32>
    %96 = arith.addf %93, %95 : vector<8x32xf32>
    %97 = arith.addf %1, %96 : vector<8x32xf32>
    %c0_32 = arith.constant 0 : index
    %c0_33 = arith.constant 0 : index
    %98 = vector.load %arg10[%c0_32, %c0_33] : memref<1x32xf32, #tpu.memory_space<vmem>>, vector<1x32xf32>
    %c0_34 = arith.constant 0 : index
    %c0_35 = arith.constant 0 : index
    %99 = vector.load %arg11[%c0_34, %c0_35] : memref<1x32xf32, #tpu.memory_space<vmem>>, vector<1x32xf32>
    %cst_36 = arith.constant dense<0.000000e+00> : vector<8xf32>
    %100 = vector.multi_reduction <add>, %97, %cst_36 [1] : vector<8x32xf32> to vector<8xf32>
    %101 = vector.shape_cast %100 : vector<8xf32> to vector<8x1xf32>
    %cst_37 = arith.constant 3.200000e+01 : f32
    %102 = vector.broadcast %cst_37 : f32 to vector<8x1xf32>
    %103 = arith.divf %101, %102 : vector<8x1xf32>
    %104 = vector.broadcast %103 : vector<8x1xf32> to vector<8x32xf32>
    %105 = arith.subf %97, %104 : vector<8x32xf32>
    %106 = arith.mulf %105, %105 : vector<8x32xf32>
    %cst_38 = arith.constant dense<0.000000e+00> : vector<8xf32>
    %107 = vector.multi_reduction <add>, %106, %cst_38 [1] : vector<8x32xf32> to vector<8xf32>
    %108 = vector.shape_cast %107 : vector<8xf32> to vector<8x1xf32>
    %cst_39 = arith.constant 3.200000e+01 : f32
    %109 = vector.broadcast %cst_39 : f32 to vector<8x1xf32>
    %110 = arith.divf %108, %109 : vector<8x1xf32>
    %111 = vector.broadcast %103 : vector<8x1xf32> to vector<8x32xf32>
    %112 = arith.subf %97, %111 : vector<8x32xf32>
    %cst_40 = arith.constant 9.99999974E-6 : f32
    %113 = vector.broadcast %cst_40 : f32 to vector<8x1xf32>
    %114 = arith.addf %110, %113 : vector<8x1xf32>
    %115 = math.rsqrt %114 : vector<8x1xf32>
    %116 = vector.broadcast %115 : vector<8x1xf32> to vector<8x32xf32>
    %117 = arith.mulf %112, %116 : vector<8x32xf32>
    %118 = vector.broadcast %98 : vector<1x32xf32> to vector<8x32xf32>
    %119 = arith.mulf %117, %118 : vector<8x32xf32>
    %120 = vector.broadcast %99 : vector<1x32xf32> to vector<8x32xf32>
    %121 = arith.addf %119, %120 : vector<8x32xf32>
    %122 = arith.truncf %121 : vector<8x32xf32> to vector<8x32xbf16>
    %c0_41 = arith.constant 0 : index
    %c0_42 = arith.constant 0 : index
    %123 = vector.load %arg6[%c0_41, %c0_42] : memref<32x64xbf16, #tpu.memory_space<vmem>>, vector<32x64xbf16>
    %cst_43 = arith.constant dense<0.000000e+00> : vector<8x64xf32>
    %124 = tpu.matmul %122, %123, %cst_43 {dimension_numbers = #tpu.dot_dimension_numbers<[1], [0], [0], [1], [0, 0, 1, 1], [], []>} : vector<8x32xbf16>, vector<32x64xbf16>, vector<8x64xf32> -> vector<8x64xf32>
    %c0_44 = arith.constant 0 : index
    %c0_45 = arith.constant 0 : index
    %125 = vector.load %arg7[%c0_44, %c0_45] : memref<1x64xf32, #tpu.memory_space<vmem>>, vector<1x64xf32>
    %126 = vector.broadcast %125 : vector<1x64xf32> to vector<8x64xf32>
    %127 = arith.addf %124, %126 : vector<8x64xf32>
    %cst_46 = arith.constant 0.000000e+00 : f32
    %128 = vector.broadcast %cst_46 : f32 to vector<8x64xf32>
    %129 = arith.maximumf %127, %128 : vector<8x64xf32>
    %130 = arith.truncf %129 : vector<8x64xf32> to vector<8x64xbf16>
    %c0_47 = arith.constant 0 : index
    %c0_48 = arith.constant 0 : index
    %131 = vector.load %arg8[%c0_47, %c0_48] : memref<64x32xbf16, #tpu.memory_space<vmem>>, vector<64x32xbf16>
    %cst_49 = arith.constant dense<0.000000e+00> : vector<8x32xf32>
    %132 = tpu.matmul %130, %131, %cst_49 {dimension_numbers = #tpu.dot_dimension_numbers<[1], [0], [0], [1], [0, 0, 1, 1], [], []>} : vector<8x64xbf16>, vector<64x32xbf16>, vector<8x32xf32> -> vector<8x32xf32>
    %c0_50 = arith.constant 0 : index
    %c0_51 = arith.constant 0 : index
    %133 = vector.load %arg9[%c0_50, %c0_51] : memref<1x32xf32, #tpu.memory_space<vmem>>, vector<1x32xf32>
    %134 = vector.broadcast %133 : vector<1x32xf32> to vector<8x32xf32>
    %135 = arith.addf %132, %134 : vector<8x32xf32>
    %136 = arith.addf %121, %135 : vector<8x32xf32>
    %c0_52 = arith.constant 0 : index
    %c0_53 = arith.constant 0 : index
    %137 = vector.load %arg12[%c0_52, %c0_53] : memref<1x32xf32, #tpu.memory_space<vmem>>, vector<1x32xf32>
    %c0_54 = arith.constant 0 : index
    %c0_55 = arith.constant 0 : index
    %138 = vector.load %arg13[%c0_54, %c0_55] : memref<1x32xf32, #tpu.memory_space<vmem>>, vector<1x32xf32>
    %cst_56 = arith.constant dense<0.000000e+00> : vector<8xf32>
    %139 = vector.multi_reduction <add>, %136, %cst_56 [1] : vector<8x32xf32> to vector<8xf32>
    %140 = vector.shape_cast %139 : vector<8xf32> to vector<8x1xf32>
    %cst_57 = arith.constant 3.200000e+01 : f32
    %141 = vector.broadcast %cst_57 : f32 to vector<8x1xf32>
    %142 = arith.divf %140, %141 : vector<8x1xf32>
    %143 = vector.broadcast %142 : vector<8x1xf32> to vector<8x32xf32>
    %144 = arith.subf %136, %143 : vector<8x32xf32>
    %145 = arith.mulf %144, %144 : vector<8x32xf32>
    %cst_58 = arith.constant dense<0.000000e+00> : vector<8xf32>
    %146 = vector.multi_reduction <add>, %145, %cst_58 [1] : vector<8x32xf32> to vector<8xf32>
    %147 = vector.shape_cast %146 : vector<8xf32> to vector<8x1xf32>
    %cst_59 = arith.constant 3.200000e+01 : f32
    %148 = vector.broadcast %cst_59 : f32 to vector<8x1xf32>
    %149 = arith.divf %147, %148 : vector<8x1xf32>
    %150 = vector.broadcast %142 : vector<8x1xf32> to vector<8x32xf32>
    %151 = arith.subf %136, %150 : vector<8x32xf32>
    %cst_60 = arith.constant 9.99999974E-6 : f32
    %152 = vector.broadcast %cst_60 : f32 to vector<8x1xf32>
    %153 = arith.addf %149, %152 : vector<8x1xf32>
    %154 = math.rsqrt %153 : vector<8x1xf32>
    %155 = vector.broadcast %154 : vector<8x1xf32> to vector<8x32xf32>
    %156 = arith.mulf %151, %155 : vector<8x32xf32>
    %157 = vector.broadcast %137 : vector<1x32xf32> to vector<8x32xf32>
    %158 = arith.mulf %156, %157 : vector<8x32xf32>
    %159 = vector.broadcast %138 : vector<1x32xf32> to vector<8x32xf32>
    %160 = arith.addf %158, %159 : vector<8x32xf32>
    %161 = vector.shape_cast %160 : vector<8x32xf32> to vector<1x8x32xf32>
    %c0_61 = arith.constant 0 : index
    %c0_62 = arith.constant 0 : index
    %c0_63 = arith.constant 0 : index
    %162 = vector.load %arg14[%c0_61, %c0_62, %c0_63] : memref<1x8x32xf32, #tpu.memory_space<vmem>>, vector<1x8x32xf32>
    tpu.vector_store %arg14[%c0_61, %c0_62, %c0_63], %161 {strides = array<i32>} : memref<1x8x32xf32, #tpu.memory_space<vmem>>, vector<1x8x32xf32>,
    return
  }
  func.func @transform_0(%arg0: i32) -> (i32, i32, i32) {
    %c0_i32 = arith.constant 0 : i32
    %c0_i32_0 = arith.constant 0 : i32
    %c0_i32_1 = arith.constant 0 : i32
    return %arg0, %c0_i32, %c0_i32_0 : i32, i32, i32
  }
  func.func @transform_1(%arg0: i32) -> (i32, i32) {
    %c0_i32 = arith.constant 0 : i32
    %c0_i32_0 = arith.constant 0 : i32
    %c0_i32_1 = arith.constant 0 : i32
    return %c0_i32, %c0_i32_0 : i32, i32
  }
  func.func @transform_2(%arg0: i32) -> (i32, i32) {
    %c0_i32 = arith.constant 0 : i32
    %c0_i32_0 = arith.constant 0 : i32
    %c0_i32_1 = arith.constant 0 : i32
    return %c0_i32, %c0_i32_0 : i32, i32
  }
  func.func @transform_3(%arg0: i32) -> (i32, i32) {
    %c0_i32 = arith.constant 0 : i32
    %c0_i32_0 = arith.constant 0 : i32
    %c0_i32_1 = arith.constant 0 : i32
    return %c0_i32, %c0_i32_0 : i32, i32
  }
  func.func @transform_4(%arg0: i32) -> (i32, i32) {
    %c0_i32 = arith.constant 0 : i32
    %c0_i32_0 = arith.constant 0 : i32
    %c0_i32_1 = arith.constant 0 : i32
    return %c0_i32, %c0_i32_0 : i32, i32
  }
  func.func @transform_5(%arg0: i32) -> (i32, i32) {
    %c0_i32 = arith.constant 0 : i32
    %c0_i32_0 = arith.constant 0 : i32
    %c0_i32_1 = arith.constant 0 : i32
    return %c0_i32, %c0_i32_0 : i32, i32
  }
  func.func @transform_6(%arg0: i32) -> (i32, i32) {
    %c0_i32 = arith.constant 0 : i32
    %c0_i32_0 = arith.constant 0 : i32
    %c0_i32_1 = arith.constant 0 : i32
    return %c0_i32, %c0_i32_0 : i32, i32
  }
  func.func @transform_7(%arg0: i32) -> (i32, i32) {
    %c0_i32 = arith.constant 0 : i32
    %c0_i32_0 = arith.constant 0 : i32
    %c0_i32_1 = arith.constant 0 : i32
    return %c0_i32, %c0_i32_0 : i32, i32
  }
  func.func @transform_8(%arg0: i32) -> (i32, i32) {
    %c0_i32 = arith.constant 0 : i32
    %c0_i32_0 = arith.constant 0 : i32
    %c0_i32_1 = arith.constant 0 : i32
    return %c0_i32, %c0_i32_0 : i32, i32
  }
  func.func @transform_9(%arg0: i32) -> (i32, i32) {
    %c0_i32 = arith.constant 0 : i32
    %c0_i32_0 = arith.constant 0 : i32
    %c0_i32_1 = arith.constant 0 : i32
    return %c0_i32, %c0_i32_0 : i32, i32
  }
  func.func @transform_10(%arg0: i32) -> (i32, i32) {
    %c0_i32 = arith.constant 0 : i32
    %c0_i32_0 = arith.constant 0 : i32
    %c0_i32_1 = arith.constant 0 : i32
    return %c0_i32, %c0_i32_0 : i32, i32
  }
  func.func @transform_11(%arg0: i32) -> (i32, i32) {
    %c0_i32 = arith.constant 0 : i32
    %c0_i32_0 = arith.constant 0 : i32
    %c0_i32_1 = arith.constant 0 : i32
    return %c0_i32, %c0_i32_0 : i32, i32
  }
  func.func @transform_12(%arg0: i32) -> (i32, i32) {
    %c0_i32 = arith.constant 0 : i32
    %c0_i32_0 = arith.constant 0 : i32
    %c0_i32_1 = arith.constant 0 : i32
    return %c0_i32, %c0_i32_0 : i32, i32
  }
  func.func @transform_13(%arg0: i32) -> (i32, i32, i32) {
    %c0_i32 = arith.constant 0 : i32
    %c0_i32_0 = arith.constant 0 : i32
    %c0_i32_1 = arith.constant 0 : i32
    return %arg0, %c0_i32, %c0_i32_0 : i32, i32, i32
  }
  func.func @transform_14(%arg0: i32) -> (i32, i32, i32) {
    %c0_i32 = arith.constant 0 : i32
    %c0_i32_0 = arith.constant 0 : i32
    %c0_i32_1 = arith.constant 0 : i32
    return %arg0, %c0_i32, %c0_i32_0 : i32, i32, i32
  }
}

</mosaic_0001>

<bundles_post_ra>
// kernel: tpu_custom_call.1
= control target key start
LH: loop header
LB: loop body
LE: loop exit
PB: predicated region body
PF: predicated region fallthrough
CT: control target
= control target key end

     0   :  { %s1757_s0 = inlined_call_operand.vmem [shape: f32[2,8,32], index: 0, kind: input, shape index: {}]   ;;  %s1758_s1 = inlined_call_operand.vmem [shape: bf16[32,96], index: 1, kind: input, shape index: {}]   ;;  %s1759_s2 = inlined_call_operand.vmem [shape: f32[1,96], index: 2, kind: input, shape index: {}]   ;;  %s1760_s3 = inlined_call_operand.vmem [shape: bf16[32,32], index: 3, kind: input, shape index: {}]   ;;  %s1761_s4 = inlined_call_operand.vmem [shape: f32[1,32], index: 4, kind: input, shape index: {}]   ;;  %s1762_s5 = inlined_call_operand.hbm [shape: bf16[32,64], index: 5, kind: input, shape index: {}]   ;;  %s1763_s6 = inlined_call_operand.vmem [shape: f32[1,64], index: 6, kind: input, shape index: {}]   ;;  %s1764_s7 = inlined_call_operand.vmem [shape: bf16[64,32], index: 7, kind: input, shape index: {}]   ;;  %s1765_s8 = inlined_call_operand.vmem [shape: f32[1,32], index: 8, kind: input, shape index: {}]   ;;  %s1766_s9 = inlined_call_operand.vmem [shape: f32[1,32], index: 9, kind: input, shape index: {}]   ;;  %s1767_s10 = inlined_call_operand.vmem [shape: f32[1,32], index: 10, kind: input, shape index: {}]   ;;  %s1768_s11 = inlined_call_operand.vmem [shape: f32[1,32], index: 11, kind: input, shape index: {}]   ;;  %s1769_s12 = inlined_call_operand.vmem [shape: f32[1,32], index: 12, kind: input, shape index: {}]   ;;  %s1770_s13 = inlined_call_operand.hbm [shape: f32[2,8,32], index: 13, kind: output, shape index: {0}]   ;;  %s1771_s14 = inlined_call_operand.hbm [shape: f32[2,8,8], index: 14, kind: output, shape index: {1}]  }
   0x1   :  { %1776 = sst [smem:[#allocation14_spill]] %s1757_s0 }
   0x2   :  { %1777 = sst [smem:[#allocation15_spill]] %s1758_s1 }
   0x3   :  { %1778 = sst [smem:[#allocation16_spill]] %s1759_s2 }
   0x4   :  { %1779 = sst [smem:[#allocation17_spill]] %s1760_s3 }
   0x5   :  { %1780 = sst [smem:[#allocation18_spill]] %s1761_s4 }
   0x6   :  { %1781 = sst [smem:[#allocation19_spill]] %s1762_s5 }
   0x7   :  { %20 = vsyncpa [#allocation3], 0 }
   0x8   :  { %21 = vsyncpa [#allocation4], 0 }
   0x9   :  { %23 = vsyncpa [#allocation4 + $0x1], 0 }
   0xa   :  { %24 = vsyncpa [#allocation7], 0 }
   0xb   :  { %26 = vsyncpa [#allocation7 + $0x1], 0  ;;  %s1526_s29 = smov 0   ;;  %s1528_s30 = smov 0  }
   0xc   :  { %s1530_s15 = smov 0   ;;  %s1532_s16 = smov 0  }
   0xd LB: > { %1782 = sst [smem:[#allocation11_spill]] %s1427_s15  ;;  %s1547_s17 = sadd.s32 4294967295, %s1431_s16   ;;  %s1431_s16 = sphi %s1532_s16, %s1794_s16   ;;  %s1427_s15 = sphi %s1530_s15, %s1796_s15   ;;  %s1423_s30 = sphi %s1528_s30, %s1798_s30   ;;  %s1419_s29 = sphi %s1526_s29, %s1797_s29  }
   0xe   : > { %s1124_s18 = sadd.s32 4294967294, %s1431_s16   ;;  %s1551_s19 = sadd.s32 1, %s1431_s16  }
   0xf   : > { %1783 = sst [smem:[#allocation12_spill]] %s1551_s19  ;;  %s317_s20 = sadd.s32 1, %s1427_s15 }
  0x10   : > { %s314_s21 = ssub.s32 %s1431_s16, %s1551_s19  ;;  %p327_p0 = scmp.ne.s32.totalorder %s1427_s15, %s1423_s30 }
  0x11   : > { %p315_p1 = scmp.eq.s32.totalorder %s314_s21, 0  ;;  %p328_p2 = scmp.eq.s32.totalorder %s1547_s17, 1 }
  0x12   : > { %p333_p3 = scmp.ne.s32.totalorder %s1423_s30, %s1419_s29  ;;  %p334_p4 = scmp.eq.s32.totalorder %s1124_s18, 1 }
  0x13   : > { %s1562_s22 = scalar_select %p315_p1, %s1427_s15, %s317_s20  }
  0x14   : > { %p1564_p5 = por %p328_p2, %p327_p0  ;;  %p1568_p6 = por %p334_p4, %p333_p3 }
  0x15   : > { %1784 = sst [smem:[#allocation13_spill]] %s1562_s22  ;;  %p1125_p7 = scmp.ge.s32.totalorder %s1431_s16, 1 }
  0x16   : > { %p367_p8 = scmp.lt.s32.totalorder %s1431_s16, 3  ;;  %p1220_p9 = scmp.eq.s32.totalorder %s1547_s17, 0 }
  0x17   : > { %s1787_s5 = sld [smem:[#allocation19_spill]]  ;;  %s1433_s28 = smov [#allocation2]  }
  0x18   : > { %p368_p10 = pnand %p1125_p7, %p367_p8  ;;  %s392_s18 = sshll.u32 %s1433_s28, 4  ;;  %s393_s18 = int_to_ptr.vmem [resolvable:$true] %s392_s18 }
  0x19   : > { %s1434_s20 = smov 64   ;;  %s1435_s21 = smov 4  }
  0x1a   : > { %p1209_p11 = pneg %p368_p10  ;;  %436 = sbr.rel (%p368_p10) target bundleno = 1922 (0x782), region = 72 }
  0x1c   : > { %p1210_p12 = pnand %p1220_p9, %p1209_p11 }
  0x1d   : > { %s390_s27 = sshll.u32 %s1787_s5, 4  ;;  %s391_s27 = int_to_ptr.hbm [resolvable:$true] %s390_s27 }
  0x1e   : > { %1212 = dma.hbm_to_vmem [thread:$0]  (!%p1210_p12), %s391_s27, 256, %s393_s18, [#allocation3], %s1434_s20, %s1434_s20, %s1435_s21  }
  0x1f   : > { %1406 = dma.done.wait (%p1220_p9), [#allocation3], 256  }
  0x20   : > { %1408 = vsyncadd (%p1220_p9), [#allocation3], 4294967040  ;;  %p487_p13 = scmp.lt.s32.totalorder %s1547_s17, 1  ;;  %s1788_s0 = sld [smem:[#allocation14_spill]]  ;;  %vm514_vm0 = vcmask 261120   ;;  %vm537_vm1 = vcmask 64512  }
  0x21   : > { %s1789_s1 = sld [smem:[#allocation15_spill]]  ;;  %s1436_s15 = smov 104   ;;  %vm575_vm2 = vcmask 1043456   ;;  %vm778_vm3 = vcmask 130048   ;;  %vm780_vm4 = vcmask 195584   ;;  %vm934_vm9 = vcmask 523264  }
  0x22   : > { %s488_s25 = scalar_select %p487_p13, %s1547_s17, 1 }
  0x23   : > { %s1790_s2 = sld [smem:[#allocation16_spill]]  ;;  %s1437_s19 = smov 120  }
  0x24   : > { %s1132_s26 = sshll.u32 %s488_s25, 3  ;;  %s1439_s21 = smov 80  }
  0x25   : > { %s1440_s25 = smov 72   ;;  %s1442_s28 = smov 112  }
  0x26   : > { %s490_s22 = scalar_lea.vmem %s1788_s0, %s1132_s26  ;;  %s1441_s26 = smov 88  }
  0x27   : > { %v1192_v0 = vld [vmem:[%s1789_s1 + $0x8] sm:$0xff]  ;;  %v1191_v1 = vld [vmem:[%s1789_s1] sm:$0xff]  ;;  %s1443_s27 = smov 64   ;;  %s1444_s18 = smov 40  }
  0x28   : > { %v1595_v2 = vld [vmem:[%s490_s22] sm:$0xff]  ;;  %524 = vmatpush.bf16.msra.mxu0 %v1192_v0  ;;  %s1438_s22 = smov 96   ;;  %s1445_s5 = smov 56  }
  0x29   : > { %v493_v3 = vpack.c.bf16 %v1595_v2, %v1595_v2  ;;  %v1273_v4 = vld [vmem:[%s1790_s2] ss:$0 sm:$0xff]  ;;  %s1446_s20 = smov 48   ;;  %s1791_s3 = sld [smem:[#allocation17_spill]] }
  0x2a   : > { %s1792_s4 = sld [smem:[#allocation18_spill]]  ;;  %s1353_s2 = scalar_lea.hbm %s1771_s14, 16 }
  0x2c   : > { %525 = vmatpush.bf16.msra.mxu0 %v1191_v1 }
  0x2f   : > { %1141 = vmatmul.msk.bf16.vlgmr.msra.gmra.mxu0 %vm514_vm0, %v493_v3 }
  0xac   : > { %v527_v5 = vpop.f32.mrf.mxu0 }
  0xad   : > { %v528_v6 = vadd.f32 %v1273_v4, %v527_v5 }
  0xaf   : > { %v531_v7 = vpack.c.bf16 %v528_v6, %v528_v6 }
  0xb1   : > { %v533_v8 = vunpack.c.l.b16 %v531_v7 }
  0xb3   : > { %v1603_v9 = vpack.c.b16 %v533_v8, %v533_v8 }
  0xb4   : > { %v529_v10 = vpop.f32.mrf.mxu0 }
  0xb5   : > { %706 = vrot.lane.b32.xlu2 %v1603_v9, %s1436_s15  ;;  %592 = vrot.lane.b32.xlu1 %v1603_v9, %s1437_s19  ;;  %s1638_s15 = sand.u32 1, %s1423_s30  }
  0xb6   : > { %535 = vrot.lane.b32.xlu0 %v1603_v9, %s1438_s22  ;;  %s1775_s19 = sshll.u32 %s1638_s15, 3 }
  0xb7   : > { %s1643_s22 = scalar_lea.vmem [#allocation6], %s1775_s19 }
  0xbd   : > { %651 = vrot.lane.b32.xlu2 %v1603_v9, %s1439_s21  ;;  %708 = vrot.lane.b32.xlu1 %v1603_v9, %s1440_s25  ;;  %s1447_s21 = smov 8   ;;  %s1448_s25 = smov 16  }
  0xbe   : > { %594 = vrot.lane.b32.xlu0 %v1603_v9, %s1441_s26  ;;  %s1449_s26 = smov 24  }
  0xc6   : > { %649 = vrot.lane.b32.xlu0 %v1603_v9, %s1442_s28 }
 0x10f   : > { %v707_v11 = vpop.permute.xlu2 %706 }
 0x117   : > { %v652_v12 = vpop.permute.xlu2 %651 }
 0x118   : > { %v657_v13 = vsel %vm537_vm1, %v652_v12, 0 }
 0x119   : > { %666 = vmatpush.bf16.xpose.msrb.mxu0 %v657_v13 }
 0x127   : > { %v593_v14 = vpop.permute.xlu1 %592 }
 0x128   : > { %v536_v15 = vpop.permute.xlu0 %535 }
 0x129   : > { %v542_v16 = vsel %vm537_vm1, %v536_v15, 0 }
 0x12a   : > { %551 = vmatpush.bf16.xpose.msra.mxu1 %v542_v16 }
 0x12f   : > { %v709_v17 = vpop.permute.xlu1 %708 }
 0x130   : > { %v595_v18 = vpop.permute.xlu0 %594  ;;  %v714_v19 = vsel %vm537_vm1, %v709_v17, 0 }
 0x131   : > { %1142 = vmatmul.msk.bf16.vlgmr.msra.gmra.mxu1 %vm537_vm1, %v531_v7  ;;  %v600_v20 = vsel %vm537_vm1, %v595_v18, 0 }
 0x132   : > { %609 = vmatpush.bf16.xpose.msra.mxu3 %v600_v20 }
 0x138   : > { %v650_v21 = vpop.permute.xlu0 %649 }
 0x139   : > { %1144 = vmatmul.msk.bf16.vlgmr.msra.gmra.mxu3 %vm537_vm1, %v593_v14  ;;  %1146 = vmatmul.msk.bf16.vlgmr.msrb.gmra.mxu0 %vm537_vm1, %v650_v21 }
 0x13a   : > { %723 = vmatpush.bf16.xpose.msrb.mxu3 %v714_v19 }
 0x149   : > { %1148 = vmatmul.msk.bf16.vlgmr.msrb.gmra.mxu3 %vm537_vm1, %v707_v11 }
 0x1ae   : > { %v553_v22 = vpop.f32.mrf.mxu1 }
 0x1af   : > { %v557_v23 = vsel %vm537_vm1, %v553_v22, -inf }
 0x1b0   : > { %558 = vmax.xlane.f32.xlu1 %v557_v23 }
 0x1b6   : > { %v555_v24 = vpop.f32.mrf.mxu1  ;;  %v668_v25 = vpop.f32.mrf.mxu0 }
 0x1b7   : > { %v672_v30 = vsel %vm537_vm1, %v668_v25, -inf }
 0x1bc   : > { %v611_v26 = vpop.f32.mrf.mxu3 }
 0x1bd   : > { %v615_v27 = vsel %vm537_vm1, %v611_v26, -inf }
 0x1be   : > { %616 = vmax.xlane.f32.xlu2 %v615_v27  ;;  %v670_v28 = vpop.f32.mrf.mxu0  ;;  %v1194_v27 = vld [vmem:[%s1791_s3 + $0x8] sm:$0xff] }
 0x1bf   : > { %812 = vmatpush.bf16.msra.mxu0 %v1194_v27  ;;  %v1193_v28 = vld [vmem:[%s1791_s3] sm:$0xff] }
 0x1c3   : > { %813 = vmatpush.bf16.msra.mxu0 %v1193_v28 }
 0x1c4   : > { %v613_v29 = vpop.f32.mrf.mxu3 }
 0x1c6   : > { %673 = vmax.xlane.f32.xlu2 %v672_v30 }
 0x1cc   : > { %v725_v31 = vpop.f32.mrf.mxu3 }
 0x1cd   : > { %v729_v32 = vsel %vm537_vm1, %v725_v31, -inf }
 0x1ce   : > { %730 = vmax.xlane.f32.xlu0 %v729_v32 }
 0x1d4   : > { %v727_v33 = vpop.f32.mrf.mxu3 }
 0x1de   : > { %570 = vrot.lane.b32.xlu2 %v1603_v9, %s1443_s27 }
 0x1e6   : > { %742 = vrot.lane.b32.xlu2 %v1603_v9, %s1444_s18  ;;  %s1017_s18 = sshll.u32 %s1643_s22, 4  ;;  %s1018_s18 = int_to_ptr.vmem [resolvable:$true] %s1017_s18 }
 0x223   : > { %v559_v34 = vpop.xlane.xlu1 %558 }
 0x224   : > { %v560_v35 = vsub.f32 %v553_v22, %v559_v34 }
 0x226   : > { %v561_v36 = vmul.f32 1.442695, %v560_v35 }
 0x228   : > { %1281 = vpow2.f32 %v561_v36  ;;  %v1274_v36 = vld [vmem:[%s1792_s4] ss:$0 sm:$0xff] }
 0x22e   : > { %v1282_v37 = vpop.eup %1281 }
 0x22f   : > { %v563_v38 = vsel %vm537_vm1, %v1282_v37, 0.0 }
 0x230   : > { %564 = vadd.xlane.f32.xlu1 %v563_v38 }
 0x231   : > { %v617_v39 = vpop.xlane.xlu2 %616 }
 0x232   : > { %v618_v42 = vsub.f32 %v611_v26, %v617_v39 }
 0x234   : > { %v619_v44 = vmul.f32 1.442695, %v618_v42  ;;  %v1450_v42 = vmov 32.0  }
 0x239   : > { %v674_v40 = vpop.xlane.xlu2 %673 }
 0x23a   : > { %v675_v41 = vsub.f32 %v668_v25, %v674_v40 }
 0x23c   : > { %v676_v43 = vmul.f32 1.442695, %v675_v41 }
 0x23e   : > { %1283 = vpow2.f32 %v676_v43 }
 0x23f   : > { %1285 = vpow2.f32 %v619_v44 }
 0x241   : > { %v571_v45 = vpop.permute.xlu2 %570  ;;  %v731_v46 = vpop.xlane.xlu0 %730 }
 0x242   : > { %v577_v47 = vsel %vm575_vm2, %v571_v45, 0  ;;  %v732_v49 = vsub.f32 %v725_v31, %v731_v46 }
 0x243   : > { %586 = vmatpush.bf16.msra.mxu2 %v577_v47 }
 0x244   : > { %v1284_v48 = vpop.eup %1283  ;;  %v733_v51 = vmul.f32 1.442695, %v732_v49 }
 0x245   : > { %v678_v50 = vsel %vm537_vm1, %v1284_v48, 0.0  ;;  %v1286_v52 = vpop.eup %1285 }
 0x246   : > { %679 = vadd.xlane.f32.xlu0 %v678_v50  ;;  %1287 = vpow2.f32 %v733_v51  ;;  %v621_v53 = vsel %vm537_vm1, %v1286_v52, 0.0 }
 0x249   : > { %628 = vrot.lane.b32.xlu1 %v1603_v9, %s1445_s5  ;;  %v743_v61 = vpop.permute.xlu2 %742 }
 0x24a   : > { %v748_v0 = vsel %vm575_vm2, %v743_v61, 0 }
 0x24c   : > { %v1288_v54 = vpop.eup %1287 }
 0x24d   : > { %v735_v55 = vsel %vm537_vm1, %v1288_v54, 0.0 }
 0x24e   : > { %622 = vadd.xlane.f32.xlu0 %v621_v53  ;;  %v1196_v53 = vld [vmem:[#allocation2 + $0x8] sm:$0xff] }
 0x256   : > { %736 = vadd.xlane.f32.xlu0 %v735_v55  ;;  %v1200_v55 = vld [vmem:[%s1764_s7 + $0x18] sm:$0xff] }
 0x257   : > { %942 = vmatpush.bf16.msra.mxu3 %v1200_v55 }
 0x26a   : > { %685 = vrot.lane.b32.xlu0 %v1603_v9, %s1446_s20  ;;  %s991_s20 = scalar_lea.sflag [#allocation7], %s1638_s15 }
 0x2a3   : > { %v565_v56 = vpop.xlane.xlu1 %564 }
 0x2a4   : > { %1289 = vrcp.f32 %v565_v56 }
 0x2aa   : > { %v1290_v57 = vpop.eup %1289 }
 0x2ab   : > { %v567_v58 = vmul.f32 %v1290_v57, %v1282_v37 }
 0x2ad   : > { %v569_v59 = vpack.c.bf16 %v567_v58, %v567_v58 }
 0x2af   : > { %1143 = vmatmul.msk.bf16.vlgmr.msra.gmra.mxu2 %vm537_vm1, %v569_v59 }
 0x2b9   : > { %v680_v60 = vpop.xlane.xlu0 %679 }
 0x2bb   : > { %v629_v62 = vpop.permute.xlu1 %628 }
 0x2bc   : > { %v634_v63 = vsel %vm575_vm2, %v629_v62, 0 }
 0x2bd   : > { %643 = vmatpush.bf16.msrb.mxu2 %v634_v63 }
 0x2c1   : > { %757 = vmatpush.bf16.msra.mxu2 %v748_v0  ;;  %v623_v1 = vpop.xlane.xlu0 %622 }
 0x2c2   : > { %1291 = vrcp.f32 %v623_v1 }
 0x2c3   : > { %1293 = vrcp.f32 %v680_v60  ;;  %v1198_v60 = vld [vmem:[%s1764_s7 + $0x8] sm:$0xff] }
 0x2c8   : > { %v1292_v3 = vpop.eup %1291 }
 0x2c9   : > { %v625_v4 = vmul.f32 %v1292_v3, %v1286_v52  ;;  %v737_v5 = vpop.xlane.xlu0 %736  ;;  %v1294_v7 = vpop.eup %1293 }
 0x2ca   : > { %1295 = vrcp.f32 %v737_v5  ;;  %v682_v9 = vmul.f32 %v1294_v7, %v1284_v48 }
 0x2cb   : > { %v627_v6 = vpack.c.bf16 %v625_v4, %v625_v4  ;;  %v626_v8 = vadd.f32 %v625_v4, %v567_v58  ;;  %1297 = vrcp.f32 %v1450_v42  ;;  %v1199_v58 = vld [vmem:[%s1764_s7 + $0x10] sm:$0xff]  ;;  %v1275_v4 = vld [vmem:[%s1766_s9] ss:$0 sm:$0xff] }
 0x2cc   : > { %v684_v18 = vpack.c.bf16 %v682_v9, %v682_v9  ;;  %943 = vmatpush.bf16.msra.mxu3 %v1199_v58 }
 0x2cd   : > { %1145 = vmatmul.msk.bf16.vlgmr.msrb.gmra.mxu2 %vm537_vm1, %v627_v6  ;;  %v683_v11 = vadd.f32 %v682_v9, %v626_v8  ;;  %v1276_v6 = vld [vmem:[%s1767_s10] ss:$0 sm:$0xff] }
 0x2d0   : > { %v1296_v10 = vpop.eup %1295  ;;  %944 = vmatpush.bf16.msra.mxu3 %v1198_v60 }
 0x2d1   : > { %v739_v12 = vmul.f32 %v1296_v10, %v1288_v54  ;;  %v1298_v43 = vpop.eup %1297  ;;  %v1195_v54 = vld [vmem:[#allocation2] sm:$0xff] }
 0x2d2   : > { %v826_v44 = vmul.f32 32.0, %v1298_v43  ;;  %vm830_vm5 = vweird.f32 %v1298_v43 }
 0x2d3   : > { %v740_v13 = vadd.f32 %v739_v12, %v683_v11  ;;  %v741_v15 = vpack.c.bf16 %v739_v12, %v739_v12  ;;  %v1197_v11 = vld [vmem:[%s1764_s7] sm:$0xff] }
 0x2d4   : > { %v827_v45 = vsub.f32 1.0, %v826_v44  ;;  %945 = vmatpush.bf16.msra.mxu3 %v1197_v11  ;;  %v1277_v12 = vld [vmem:[%s1763_s6] ss:$0 sm:$0xff] }
 0x2d5   : > { %v763_v14 = vmul.f32 0.25, %v740_v13 }
 0x2d6   : > { %v828_v46 = vmul.f32 %v1298_v43, %v827_v45 }
 0x2d7   : > { %764 = vst.msk [vmem:[%s1643_s22] sm:$0xff] %vm537_vm1, %v763_v14 }
 0x2d8   : > { %v829_v47 = vadd.f32 %v1298_v43, %v828_v46 }
 0x2da   : > { %v1663_v48 = vsel %vm830_vm5, %v1298_v43, %v829_v47 }
 0x2dc   : > { %v686_v16 = vpop.permute.xlu0 %685 }
 0x2dd   : > { %1149 = vmatmul.msk.bf16.vlgmr.msra.gmra.mxu2 %vm537_vm1, %v741_v15  ;;  %v691_v17 = vsel %vm575_vm2, %v686_v16, 0 }
 0x2de   : > { %700 = vmatpush.bf16.msrb.mxu1 %v691_v17 }
 0x2e1   : > { %1147 = vmatmul.msk.bf16.vlgmr.msrb.gmra.mxu1 %vm537_vm1, %v684_v18  ;;  %v1278_v18 = vld [vmem:[%s1765_s8] ss:$0 sm:$0xff] }
 0x2e2   : > { %889 = vmatpush.bf16.msra.mxu1 %v1196_v53 }
 0x2e6   : > { %890 = vmatpush.bf16.msra.mxu1 %v1195_v54 }
 0x332   : > { %v588_v19 = vpop.f32.mrf.mxu2 }
 0x33a   : > { %v590_v20 = vpop.f32.mrf.mxu2 }
 0x350   : > { %v645_v21 = vpop.f32.mrf.mxu2 }
 0x351   : > { %766 = vrot.lane.b32.xlu1 %v645_v21, %s1447_s21 }
 0x358   : > { %v647_v22 = vpop.f32.mrf.mxu2 }
 0x35e   : > { %v702_v23 = vpop.f32.mrf.mxu1 }
 0x35f   : > { %770 = vrot.lane.b32.xlu2 %v702_v23, %s1448_s25  ;;  %s1187_s25 = sshll.u32 %s1547_s17, 3 }
 0x360   : > { %v759_v24 = vpop.f32.mrf.mxu2  ;;  %s1015_s27 = scalar_lea.hbm %s1771_s14, %s1187_s25 }
 0x361   : > { %774 = vrot.lane.b32.xlu1 %v759_v24, %s1449_s26  ;;  %s1019_s5 = sshll.u32 %s1015_s27, 4  ;;  %s1020_s5 = int_to_ptr.hbm [resolvable:$true] %s1019_s5 }
 0x362   : > { %s1347_s21 = sshra.s32 %s1020_s5, 4  ;;  %s1348_s21 = int_to_ptr.hbm [resolvable:$true] %s1347_s21 }
 0x363   : > { %s1349_s19 = scalar_lea.hbm %s1348_s21, 8  ;;  %p1354_p3 = scmp.lt.s32.totalorder %s1348_s21, %s1771_s14 }
 0x364   : > { %p1350_p0 = scmp.ne.s32.totalorder %s1348_s21, %s1349_s19  ;;  %p1355_p4 = scmp.lt.s32.totalorder %s1353_s2, %s1349_s19 }
 0x366   : > { %v704_v25 = vpop.f32.mrf.mxu1  ;;  %p1351_p1 = pnand %p1350_p0, %p1564_p5  ;;  %p1356_p7 = por %p1355_p4, %p1354_p3 }
 0x368   : > { %v761_v26 = vpop.f32.mrf.mxu2  ;;  %p1352_p2 = pneg %p1351_p1 }
 0x36a   : > { %p1357_p8 = pnand %p1356_p7, %p1352_p2 }
 0x3b9   : > { %v771_v31 = vpop.permute.xlu2 %770 }
 0x3c3   : > { %v767_v29 = vpop.permute.xlu1 %766 }
 0x3c4   : > { %v777_v30 = vsel %vm537_vm1, %v588_v19, %v767_v29 }
 0x3c5   : > { %v779_v33 = vsel %vm778_vm3, %v777_v30, %v771_v31 }
 0x3d3   : > { %v775_v32 = vpop.permute.xlu1 %774 }
 0x3d4   : > { %v781_v34 = vsel %vm780_vm4, %v779_v33, %v775_v32 }
 0x3d5   : > { %v782_v35 = vpack.c.bf16 %v781_v34, %v781_v34 }
 0x3d7   : > { %1158 = vmatmul.msk.bf16.vlgmr.msra.gmra.mxu0 %vm514_vm0, %v782_v35 }
 0x454   : > { %v815_v37 = vpop.f32.mrf.mxu0 }
 0x455   : > { %v816_v38 = vadd.f32 %v1274_v36, %v815_v37 }
 0x457   : > { %v819_v39 = vadd.f32 %v816_v38, %v1595_v2 }
 0x459   : > { %v822_v40 = vsel %vm514_vm0, %v819_v39, 0.0 }
 0x45a   : > { %823 = vadd.xlane.f32.xlu2 %v822_v40 }
 0x45c   : > { %v817_v41 = vpop.f32.mrf.mxu0 }
 0x4cd   : > { %v824_v49 = vpop.xlane.xlu2 %823 }
 0x4ce   : > { %v832_v50 = vmul.f32 %v1663_v48, %v824_v49 }
 0x4d0   : > { %v833_v51 = vsub.f32 %v819_v39, %v832_v50 }
 0x4d2   : > { %v834_v52 = vmul.f32 %v833_v51, %v833_v51 }
 0x4d4   : > { %v835_v2 = vsel %vm514_vm0, %v834_v52, 0.0 }
 0x4d5   : > { %836 = vadd.xlane.f32.xlu1 %v835_v2 }
 0x548   : > { %v837_v56 = vpop.xlane.xlu1 %836 }
 0x549   : > { %v838_v57 = vmul.f32 %v837_v56, %v1663_v48 }
 0x54b   : > { %v839_v59 = vadd.f32 1e-05, %v838_v57 }
 0x54d   : > { %1299 = vrsqrt.f32 %v839_v59  ;;  %vm846_vm7 = vweird.f32 %v839_v59 }
 0x553   : > { %v1300_v61 = vpop.eup %1299 }
 0x554   : > { %v841_v62 = vmul.f32 %v1300_v61, %v839_v59  ;;  %vm847_vm6 = vweird.f32 %v1300_v61 }
 0x555   : > { %vm848_vm8 = vmor %vm846_vm7, %vm847_vm6 }
 0x556   : > { %v842_v63 = vmul.f32 %v1300_v61, %v841_v62 }
 0x558   : > { %v843_v0 = vmul.f32 0.5, %v842_v63 }
 0x55a   : > { %v844_v1 = vsub.f32 1.5, %v843_v0 }
 0x55c   : > { %v845_v3 = vmul.f32 %v1300_v61, %v844_v1 }
 0x55e   : > { %v849_v5 = vsel %vm848_vm8, %v1300_v61, %v845_v3 }
 0x55f   : > { %v850_v7 = vmul.f32 %v849_v5, %v833_v51 }
 0x561   : > { %v854_v8 = vmul.f32 %v1275_v4, %v850_v7 }
 0x563   : > { %v858_v9 = vadd.f32 %v1276_v6, %v854_v8 }
 0x565   : > { %v859_v10 = vpack.c.bf16 %v858_v9, %v858_v9 }
 0x567   : > { %1167 = vmatmul.msk.bf16.vlgmr.msra.gmra.mxu1 %vm514_vm0, %v859_v10 }
 0x5e4   : > { %v892_v13 = vpop.f32.mrf.mxu1 }
 0x5e5   : > { %v893_v14 = vadd.f32 %v1277_v12, %v892_v13 }
 0x5e7   : > { %v896_v15 = vmax.f32 %v893_v14, 0.0 }
 0x5e9   : > { %v897_v16 = vpack.c.bf16 %v896_v15, %v896_v15 }
 0x5eb   : > { %1184 = vmatmul.msk.bf16.vlgmr.msra.gmra.mxu3 %vm934_vm9, %v897_v16 }
 0x5ec   : > { %v894_v17 = vpop.f32.mrf.mxu1 }
 0x66e   : > { %v947_v19 = vpop.f32.mrf.mxu3 }
 0x66f   : > { %v948_v20 = vadd.f32 %v1278_v18, %v947_v19 }
 0x671   : > { %v951_v21 = vadd.f32 %v948_v20, %v858_v9 }
 0x673   : > { %v954_v22 = vsel %vm514_vm0, %v951_v21, 0.0 }
 0x674   : > { %955 = vadd.xlane.f32.xlu0 %v954_v22 }
 0x676   : > { %v949_v23 = vpop.f32.mrf.mxu3 }
 0x6e7   : > { %v956_v24 = vpop.xlane.xlu0 %955 }
 0x6e8   : > { %v957_v25 = vmul.f32 %v956_v24, %v1663_v48 }
 0x6ea   : > { %v958_v26 = vsub.f32 %v951_v21, %v957_v25 }
 0x6ec   : > { %v959_v27 = vmul.f32 %v958_v26, %v958_v26 }
 0x6ee   : > { %v960_v28 = vsel %vm514_vm0, %v959_v27, 0.0 }
 0x6ef   : > { %961 = vadd.xlane.f32.xlu2 %v960_v28 }
 0x6f0   : > { %1360 = shalt.err (!%p1357_p8)
}
 0x6f1   : > { %1206 = dma.vmem_to_hbm [thread:$0]  (%p1564_p5), %s1018_s18, 128, %s1020_s5, %s991_s20   ;;  %v1279_v38 = vld [vmem:[%s1768_s11] ss:$0 sm:$0xff] }
 0x6f2   : > { %s1001_s4 = scalar_lea.hbm %s1770_s13, %s1187_s25  ;;  %v1280_v41 = vld [vmem:[%s1769_s12] ss:$0 sm:$0xff]  ;;  %s1793_s26 = sshll.u32 %s1638_s15, 3 }
 0x6f3   : > { %s479_s28 = scalar_lea.vmem [#allocation5], %s1793_s26  ;;  %s1005_s18 = sshll.u32 %s1001_s4, 4  ;;  %s1006_s18 = int_to_ptr.hbm [resolvable:$true] %s1005_s18 }
 0x6f4   : > { %s1003_s27 = sshll.u32 %s479_s28, 4  ;;  %s986_s17 = scalar_lea.sflag [#allocation4], %s1638_s15  ;;  %s1004_s27 = int_to_ptr.vmem [resolvable:$true] %s1003_s27 }
 0x6f5   : > { %s1375_s5 = sshra.s32 %s1006_s18, 4  ;;  %s1381_s0 = scalar_lea.hbm %s1770_s13, 16  ;;  %s1376_s5 = int_to_ptr.hbm [resolvable:$true] %s1375_s5 }
 0x6f6   : > { %s1377_s25 = scalar_lea.hbm %s1376_s5, 8  ;;  %p1382_p12 = scmp.lt.s32.totalorder %s1376_s5, %s1770_s13 }
 0x6f7   : > { %p1378_p9 = scmp.ne.s32.totalorder %s1376_s5, %s1377_s25  ;;  %p1383_p13 = scmp.lt.s32.totalorder %s1381_s0, %s1377_s25 }
 0x6f9   : > { %p1379_p10 = pnand %p1378_p9, %p1564_p5  ;;  %p1384_p0 = por %p1383_p13, %p1382_p12 }
 0x6fb   : > { %p1380_p11 = pneg %p1379_p10 }
 0x6fd   : > { %p1385_p1 = pnand %p1384_p0, %p1380_p11 }
 0x762   : > { %v962_v29 = vpop.xlane.xlu2 %961 }
 0x763   : > { %v963_v30 = vmul.f32 %v962_v29, %v1663_v48 }
 0x765   : > { %v964_v31 = vadd.f32 1e-05, %v963_v30 }
 0x767   : > { %1301 = vrsqrt.f32 %v964_v31  ;;  %vm971_vm11 = vweird.f32 %v964_v31 }
 0x76d   : > { %v1302_v32 = vpop.eup %1301 }
 0x76e   : > { %v966_v33 = vmul.f32 %v1302_v32, %v964_v31  ;;  %vm972_vm10 = vweird.f32 %v1302_v32 }
 0x76f   : > { %vm973_vm12 = vmor %vm971_vm11, %vm972_vm10 }
 0x770   : > { %v967_v34 = vmul.f32 %v1302_v32, %v966_v33 }
 0x772   : > { %v968_v35 = vmul.f32 0.5, %v967_v34 }
 0x774   : > { %v969_v36 = vsub.f32 1.5, %v968_v35 }
 0x776   : > { %v970_v37 = vmul.f32 %v1302_v32, %v969_v36 }
 0x778   : > { %v974_v39 = vsel %vm973_vm12, %v1302_v32, %v970_v37 }
 0x779   : > { %v975_v40 = vmul.f32 %v974_v39, %v958_v26 }
 0x77b   : > { %v979_v42 = vmul.f32 %v1279_v38, %v975_v40 }
 0x77d   : > { %v983_v43 = vadd.f32 %v1280_v41, %v979_v42 }
 0x77f   : > { %984 = vst.msk [vmem:[%s479_s28] sm:$0xff] %vm514_vm0, %v983_v43 }
 0x780   : > { %1388 = shalt.err (!%p1385_p1)
}
 0x781   : > { %1205 = dma.vmem_to_hbm [thread:$0]  (%p1564_p5), %s1004_s27, 128, %s1006_s18, %s986_s17  }
 0x782 PF: > { %p1222_p2 = scmp.ge.s32.totalorder %s1431_s16, 2  ;;  %s1031_s15 = sand.u32 1, %s1419_s29  }
 0x783   : > { %s1032_s3 = scalar_lea.sflag [#allocation4], %s1031_s15 }
 0x784   : > { %p1214_p3 = pnand %p1222_p2, %p1568_p6 }
 0x786   : > { %p1215_p4 = pneg %p1214_p3 }
 0x788   : > { %1410 = dma.done.wait (%p1215_p4), %s1032_s3, 128  }
 0x789   : > { %1412 = vsyncadd (%p1215_p4), %s1032_s3, 4294967168  ;;  %s1042_s4 = scalar_lea.sflag [#allocation7], %s1031_s15 }
 0x78a   : > { %1414 = dma.done.wait (%p1215_p4), %s1042_s4, 128  }
 0x78b   : > { %1416 = vsyncadd (%p1215_p4), %s1042_s4, 4294967168  ;;  %s1794_s16 = sld [smem:[#allocation12_spill]]  ;;  %s1797_s29 = smov %s1423_s30 }
 0x78c   : > { %s1795_s19 = sld [smem:[#allocation11_spill]] }
 0x78d   : > { %s1796_s15 = sld [smem:[#allocation13_spill]] }
 0x791   : > { %p29_p5 = scmp.ge.s32.totalorder %s1794_s16, 4  }
 0x792   : > { %s1798_s30 = smov %s1795_s19 }
 0x793   :  { %31 = sbr.rel (!%p29_p5) target bundleno = 13 (0xd), region = 129 }
 0x798   :  { %1048 = vsyncpa [#allocation3], 1 }
 0x799   :  { %1050 = vsyncpa [#allocation3 + $0x1], 1 }
 0x79a   :  { %1051 = vsyncpa [#allocation4], 1 }
 0x79b   :  { %1053 = vsyncpa [#allocation4 + $0x1], 1 }
 0x79c   :  { %1054 = vsyncpa [#allocation7], 1 }
 0x79d   :  { %1056 = vsyncpa [#allocation7 + $0x1], 1 }

</bundles_post_ra>
